<compile_context>
chip_gen: v7x
topology: tpu7x:2x2x1
jax: 0.10.0
libtpu: 0.0.40
codegen_flags: <defaults>
</compile_context>

<pallas_src>
import functools
import math

import jax
import jax.numpy as jnp
from jax.experimental import pallas as pl
from jax.experimental.pallas import tpu as pltpu


def _round_up(x, m):
    return ((x + m - 1) // m) * m


def _label_smoothing_kernel(x_ref, tgt_ref, out_ref, *,
                            n_rows, block_rows, padding_idx,
                            confidence, base, ent_per_row):
    """One row block: full KL partial sum -> out_ref (1, 8, 128)."""
    i = pl.program_id(0)

    x = x_ref[...].astype(jnp.float32)          # (tm, V)
    tgt = tgt_ref[...]                          # (tm, 1) int32
    tm, v = x.shape

    # Row validity: the final row block may overrun the array; out-of-bounds
    # rows of the VMEM tile hold unspecified data, so they are masked out
    # *after* the multiply (select drops NaN/Inf from the dead branch).
    row_idx = jax.lax.broadcasted_iota(jnp.int32, (tm, 1), 0) + i * block_rows
    row_ok = jnp.logical_and(row_idx < n_rows, tgt != padding_idx)  # (tm, 1)

    col = jax.lax.broadcasted_iota(jnp.int32, (tm, v), 1)
    w = jnp.where(col == tgt, jnp.float32(confidence), jnp.float32(base))
    contrib = jnp.where(row_ok, w * x, jnp.float32(0.0))
    cross = jnp.sum(contrib)

    # true_dist[:, padding_idx] = 0: for non-padded rows target != padding_idx,
    # so that column picked up exactly `base` above -> subtract it once via a
    # static lane slice (kept off the per-element path).
    xpad = x[:, padding_idx:padding_idx + 1]                        # (tm, 1)
    cross = cross - jnp.float32(base) * jnp.sum(
        jnp.where(row_ok, xpad, jnp.float32(0.0)))

    # Entropy term is analytic: ent_per_row for each non-padded row.
    n_real = jnp.sum(row_ok.astype(jnp.float32))
    total = n_real * jnp.float32(ent_per_row) - cross
    out_ref[...] = jnp.full(out_ref.shape, total, dtype=out_ref.dtype)


def label_smoothing_loss(x, target, *, size, padding_idx, smoothing,
                         block_rows=None, vmem_budget_bytes=8 << 20):
    """Pallas LabelSmoothing loss = KLDivLoss(reduction='sum')(x, true_dist).

    x: (N, V) log-probabilities (float32 or bfloat16), V == size.
    target: (N,) integer class indices.
    """
    n, v = x.shape
    assert v == size
    assert 0 <= padding_idx < size

    confidence = 1.0 - smoothing
    base = smoothing / (size - 2)
    ent_per_row = 0.0
    if confidence > 0.0:
        ent_per_row += confidence * math.log(confidence)
    if base > 0.0:
        ent_per_row += (size - 2) * base * math.log(base)

    itemsize = jnp.dtype(x.dtype).itemsize
    row_align = {4: 8, 2: 16, 1: 32}.get(itemsize, 8)

    # Row tile: target ~vmem_budget_bytes of x per (double-buffered) block.
    # TODO(synk): for vocabularies so large that even a `row_align`-row tile
    # exceeds the VMEM budget, a vocab-tiled 2-D-grid variant would be needed.
    if block_rows is None:
        bytes_per_row = _round_up(v, 128) * itemsize
        block_rows = max(1, vmem_budget_bytes // max(bytes_per_row, 1))
    tm = max(row_align,
             min(_round_up(block_rows, row_align), _round_up(n, row_align)))
    n_blocks = int(pl.cdiv(n, tm))

    tgt2d = target.astype(jnp.int32).reshape(n, 1)

    x_tile_bytes = tm * _round_up(v, 128) * itemsize
    vmem_limit = int(min(max(2 * x_tile_bytes + (16 << 20), 32 << 20), 64 << 20))

    kernel = functools.partial(
        _label_smoothing_kernel,
        n_rows=n, block_rows=tm, padding_idx=padding_idx,
        confidence=confidence, base=base, ent_per_row=ent_per_row)

    out = pl.pallas_call(
        kernel,
        out_shape=jax.ShapeDtypeStruct((n_blocks, 8, 128), jnp.float32),
        grid_spec=pltpu.PrefetchScalarGridSpec(
            num_scalar_prefetch=0,
            grid=(n_blocks,),
            in_specs=[
                # Full-vocab block: last dim equals the array dim, so no
                # 128-alignment padding (and no copy of x) is ever needed.
                pl.BlockSpec((tm, v), lambda i: (i, 0)),
                pl.BlockSpec((tm, 1), lambda i: (i, 0)),
            ],
            out_specs=pl.BlockSpec((1, 8, 128), lambda i: (i, 0, 0)),
        ),
        compiler_params=pltpu.CompilerParams(
            dimension_semantics=("parallel",),
            vmem_limit_bytes=vmem_limit),
    )(x, tgt2d)

    # One partial KL sum per row block; tiny final reduction outside.
    return jnp.sum(out[:, 0, 0])


def _reference_loss(x, target, *, size, padding_idx, smoothing):
    """Plain-JAX reference mirroring the PyTorch module."""
    n, v = x.shape
    confidence = 1.0 - smoothing
    base = smoothing / (size - 2)
    col = jnp.arange(v)[None, :]
    tgt = target[:, None]
    td = jnp.where(col == tgt, jnp.float32(confidence), jnp.float32(base))
    td = jnp.where(col == padding_idx, 0.0, td)
    td = jnp.where(tgt == padding_idx, 0.0, td)
    t_log_t = jnp.where(td > 0.0, td * jnp.log(jnp.maximum(td, 1e-30)), 0.0)
    return jnp.sum(t_log_t - td * x.astype(jnp.float32))


if __name__ == "__main__":
    # Small synthetic config: vocab not a multiple of 128 (exercises the
    # unaligned full-vocab block), row count not a multiple of the row tile
    # (exercises ragged-block masking).
    SIZE = 1000         # vocab size (x.size(1) == size)
    PADDING_IDX = 1     # mBART pad token id
    SMOOTHING = 0.1
    N = 70              # flattened batch*seq rows (e.g. batch=7, seq=10)

    key = jax.random.PRNGKey(0)
    kx, kt = jax.random.split(key)

    logits = jax.random.normal(kx, (N, SIZE), dtype=jnp.float32)
    x = jax.nn.log_softmax(logits, axis=-1)     # KLDivLoss expects log-probs
    target = jax.random.randint(kt, (N,), 0, SIZE, dtype=jnp.int32)
    target = target.at[3].set(PADDING_IDX).at[10].set(PADDING_IDX)
    target = target.at[45].set(PADDING_IDX)     # exercise row-zeroing path

    ref = _reference_loss(
        x, target, size=SIZE, padding_idx=PADDING_IDX, smoothing=SMOOTHING)

    # 1) Default tile path (single row block covering all 70 rows).
    loss1 = label_smoothing_loss(
        x, target, size=SIZE, padding_idx=PADDING_IDX, smoothing=SMOOTHING)
    loss1 = jax.block_until_ready(loss1)
    assert jnp.allclose(loss1, ref, rtol=1e-4, atol=5e-2), (loss1, ref)

    # 2) Multi-block path: 3 row blocks of 32, last one ragged (rows 64..69
    #    real, 70..95 masked) -> exercises the in-kernel validity masking.
    loss2 = label_smoothing_loss(
        x, target, size=SIZE, padding_idx=PADDING_IDX, smoothing=SMOOTHING,
        block_rows=32)
    loss2 = jax.block_until_ready(loss2)
    assert jnp.allclose(loss2, ref, rtol=1e-4, atol=5e-2), (loss2, ref)

    # TODO(synk): the PyTorch module also caches self.true_dist as a module
    # attribute; only the scalar loss (the forward return value) is produced.
    print("KERNEL_OK")
</pallas_src>

<mosaic_0001>
module attributes {stable_mosaic.version = 11 : i64} {
  func.func @_label_smoothing_kernel(%arg0: i32, %arg1: memref<72x1000xf32, #tpu.memory_space<vmem>>, %arg2: memref<72x1xi32, #tpu.memory_space<vmem>>, %arg3: memref<1x8x128xf32, #tpu.memory_space<vmem>>) attributes {dimension_semantics = [#tpu.dimension_semantics<parallel>], iteration_bounds = array<i64: 1>, scalar_prefetch = 0 : i64, scratch_operands = 0 : i64, tpu.core_type = #tpu.core_type<tc>, window_params = [{transform_indices = @transform_0, window_bounds = array<i64: 72, 1000>}, {transform_indices = @transform_1, window_bounds = array<i64: 72, 1>}, {transform_indices = @transform_2, window_bounds = array<i64: 1, 8, 128>}]} {
    %c0 = arith.constant 0 : index
    %c0_0 = arith.constant 0 : index
    %0 = vector.load %arg1[%c0, %c0_0] : memref<72x1000xf32, #tpu.memory_space<vmem>>, vector<72x1000xf32>
    %c0_1 = arith.constant 0 : index
    %c0_2 = arith.constant 0 : index
    %1 = vector.load %arg2[%c0_1, %c0_2] : memref<72x1xi32, #tpu.memory_space<vmem>>, vector<72x1xi32>
    %2 = tpu.iota {dimensions = array<i32: 0>} : vector<72x1xi32>
    %c72_i32 = arith.constant 72 : i32
    %3 = arith.muli %arg0, %c72_i32 : i32
    %4 = vector.broadcast %3 : i32 to vector<72x1xi32>
    %5 = arith.addi %2, %4 : vector<72x1xi32>
    %c70_i32 = arith.constant 70 : i32
    %6 = vector.broadcast %c70_i32 : i32 to vector<72x1xi32>
    %7 = arith.cmpi slt, %5, %6 : vector<72x1xi32>
    %c1_i32 = arith.constant 1 : i32
    %8 = vector.broadcast %c1_i32 : i32 to vector<72x1xi32>
    %9 = arith.cmpi ne, %1, %8 : vector<72x1xi32>
    %10 = arith.andi %7, %9 : vector<72x1xi1>
    %11 = tpu.iota {dimensions = array<i32: 1>} : vector<72x1000xi32>
    %12 = vector.broadcast %1 : vector<72x1xi32> to vector<72x1000xi32>
    %13 = arith.cmpi eq, %11, %12 : vector<72x1000xi32>
    %cst = arith.constant 0.899999976 : f32
    %cst_3 = arith.constant 1.00200399E-4 : f32
    %14 = vector.broadcast %cst : f32 to vector<72x1000xf32>
    %15 = vector.broadcast %cst_3 : f32 to vector<72x1000xf32>
    %16 = arith.select %13, %14, %15 : vector<72x1000xi1>, vector<72x1000xf32>
    %17 = arith.mulf %16, %0 : vector<72x1000xf32>
    %cst_4 = arith.constant 0.000000e+00 : f32
    %18 = vector.shape_cast %10 : vector<72x1xi1> to vector<72x1xi1>
    %19 = vector.broadcast %18 : vector<72x1xi1> to vector<72x1000xi1>
    %20 = vector.broadcast %cst_4 : f32 to vector<72x1000xf32>
    %21 = arith.select %19, %17, %20 : vector<72x1000xi1>, vector<72x1000xf32>
    %22 = vector.shape_cast %21 : vector<72x1000xf32> to vector<1x72x1000xf32>
    %cst_5 = arith.constant dense<0.000000e+00> : vector<1xf32>
    %23 = vector.multi_reduction <add>, %22, %cst_5 [1, 2] : vector<1x72x1000xf32> to vector<1xf32>
    %24 = vector.shape_cast %23 : vector<1xf32> to vector<1x1x1xf32>
    %25 = vector.extract %24[0, 0, 0] : f32 from vector<1x1x1xf32>
    %26 = vector.extract_strided_slice %0 {offsets = [0, 1], sizes = [72, 1], strides = [1, 1]} : vector<72x1000xf32> to vector<72x1xf32>
    %cst_6 = arith.constant 0.000000e+00 : f32
    %27 = vector.broadcast %cst_6 : f32 to vector<72x1xf32>
    %28 = arith.select %10, %26, %27 : vector<72x1xi1>, vector<72x1xf32>
    %29 = vector.shape_cast %28 : vector<72x1xf32> to vector<1x72x1xf32>
    %cst_7 = arith.constant dense<0.000000e+00> : vector<1xf32>
    %30 = vector.multi_reduction <add>, %29, %cst_7 [1, 2] : vector<1x72x1xf32> to vector<1xf32>
    %31 = vector.shape_cast %30 : vector<1xf32> to vector<1x1x1xf32>
    %32 = vector.extract %31[0, 0, 0] : f32 from vector<1x1x1xf32>
    %cst_8 = arith.constant 1.00200399E-4 : f32
    %33 = arith.mulf %cst_8, %32 : f32
    %34 = arith.subf %25, %33 : f32
    %35 = arith.extui %10 : vector<72x1xi1> to vector<72x1xi32>
    %36 = arith.sitofp %35 : vector<72x1xi32> to vector<72x1xf32>
    %37 = vector.shape_cast %36 : vector<72x1xf32> to vector<1x72x1xf32>
    %cst_9 = arith.constant dense<0.000000e+00> : vector<1xf32>
    %38 = vector.multi_reduction <add>, %37, %cst_9 [1, 2] : vector<1x72x1xf32> to vector<1xf32>
    %39 = vector.shape_cast %38 : vector<1xf32> to vector<1x1x1xf32>
    %40 = vector.extract %39[0, 0, 0] : f32 from vector<1x1x1xf32>
    %cst_10 = arith.constant -1.01565826 : f32
    %41 = arith.mulf %40, %cst_10 : f32
    %42 = arith.subf %41, %34 : f32
    %43 = vector.broadcast %42 : f32 to vector<1x8x128xf32>
    %c0_11 = arith.constant 0 : index
    %c0_12 = arith.constant 0 : index
    %c0_13 = arith.constant 0 : index
    %44 = vector.load %arg3[%c0_11, %c0_12, %c0_13] : memref<1x8x128xf32, #tpu.memory_space<vmem>>, vector<1x8x128xf32>
    tpu.vector_store %arg3[%c0_11, %c0_12, %c0_13], %43 {strides = array<i32>} : memref<1x8x128xf32, #tpu.memory_space<vmem>>, vector<1x8x128xf32>,
    return
  }
  func.func @transform_0(%arg0: i32) -> (i32, i32) {
    %c0_i32 = arith.constant 0 : i32
    %c0_i32_0 = arith.constant 0 : i32
    return %arg0, %c0_i32 : i32, i32
  }
  func.func @transform_1(%arg0: i32) -> (i32, i32) {
    %c0_i32 = arith.constant 0 : i32
    %c0_i32_0 = arith.constant 0 : i32
    return %arg0, %c0_i32 : i32, i32
  }
  func.func @transform_2(%arg0: i32) -> (i32, i32, i32) {
    %c0_i32 = arith.constant 0 : i32
    %c0_i32_0 = arith.constant 0 : i32
    %c0_i32_1 = arith.constant 0 : i32
    return %arg0, %c0_i32, %c0_i32_0 : i32, i32, i32
  }
}

</mosaic_0001>

<bundles_post_ra>
// kernel: tpu_custom_call.1
= control target key start
LH: loop header
LB: loop body
LE: loop exit
PB: predicated region body
PF: predicated region fallthrough
CT: control target
= control target key end

     0   :  { %7 = vsyncpa [#allocation3], 0  ;;  %s1481_s0 = inlined_call_operand.hbm [shape: f32[70,1000], index: 0, kind: input, shape index: {}]   ;;  %s1482_s1 = inlined_call_operand.vmem [shape: s32[70,1], index: 1, kind: input, shape index: {}]   ;;  %s1483_s2 = inlined_call_operand.hbm [shape: f32[1,8,128], index: 2, kind: output, shape index: {}]  }
   0x1   :  { %8 = vsyncpa [#allocation4], 0  ;;  %s815_s9 = smov [#allocation2]   ;;  %s767_s13 = scalar_lea.hbm %s1481_s0, 9216 }
   0x2   :  { %s14_s10 = sshll.u32 %s815_s9, 4  ;;  %p768_p0 = scmp.ne.s32.totalorder %s1481_s0, %s767_s13  ;;  %s15_s10 = int_to_ptr.vmem [resolvable:$true] %s14_s10 }
   0x3   :  { %p771_p1 = scmp.lt.u32.totalorder %s767_s13, %s1481_s0 }
   0x5   :  { %p773_p2 = pnand %p771_p1, %p768_p0 }
   0x7   :  { %776 = shalt.err (!%p773_p2)
}
   0x8   :  { %s777_s18 = scalar_lea.vmem %s15_s10, 9216  ;;  %p782_p4 = scmp.lt.s32.totalorder %s15_s10, %s15_s10 }
   0x9   :  { %p778_p3 = scmp.ne.s32.totalorder %s15_s10, %s777_s18  ;;  %p783_p5 = scmp.lt.s32.totalorder %s777_s18, %s777_s18 }
   0xb   :  { %p784_p6 = por %p783_p5, %p782_p4 }
   0xd   :  { %p785_p7 = pnand %p784_p6, %p778_p3 }
   0xf   :  { %788 = shalt.err (!%p785_p7)
}
  0x10   :  { %s816_s19 = smov 1024   ;;  %s817_s20 = smov 64  }
  0x11   :  { %20 = dma.hbm_to_vmem [thread:$0]  %s1481_s0, 9216, %s15_s10, [#allocation3], %s816_s19, %s816_s19, %s817_s20  }
  0x12   :  { %811 = dma.done.wait [#allocation3], 9216  }
  0x13   :  { %812 = vsyncadd [#allocation3], 4294958080  ;;  %v818_v0 = vmov 0   ;;  %v853_v1 = vld [vmem:[%s1482_s1 + $0x8] sm:$0xff]  ;;  %v858_v2 = vld [vmem:[%s1482_s1] sm:$0xff]  ;;  %v107_v11 = vlaneseq  ;;  %s822_s16 = smov [#allocation5]  }
  0x14   :  { %766 = vset.pattern.permute.xlu1 %v818_v0  ;;  %765 = vset.pattern.permute.xlu0 %v818_v0  ;;  %v863_v3 = vld [vmem:[%s1482_s1 + $0x10] sm:$0xff]  ;;  %vm1484_vm0 = vcmp.ne.s32.totalorder %v853_v1, 1  ;;  %vm137_vm1 = vcmp.ne.s32.totalorder %v858_v2, 1  ;;  %v877_v6 = vld [vmem:[%s1482_s1 + $0x18] sm:$0xff]  ;;  %v885_v8 = vld [vmem:[%s1482_s1 + $0x20] sm:$0xff]  ;;  %s733_s17 = sshll.u32 %s822_s16, 4  ;;  %s734_s17 = int_to_ptr.vmem [resolvable:$true] %s733_s17 }
  0x15   :  { %168 = vperm.xlu1 %766, %v853_v1   ;;  %165 = vperm.xlu0 %765, %v858_v2   ;;  %v408_v4 = vsel %vm1484_vm0, 1, %v818_v0  ;;  %v407_v5 = vsel %vm137_vm1, 1, %v818_v0  ;;  %vm139_vm2 = vcmp.ne.s32.totalorder %v863_v3, 1  ;;  %vm140_vm3 = vcmp.ne.s32.totalorder %v877_v6, 1  ;;  %v894_v10 = vld [vmem:[%s1482_s1 + $0x28] sm:$0xff]  ;;  %v903_v13 = vld [vmem:[%s1482_s1 + $0x30] sm:$0xff]  ;;  %p794_p9 = scmp.lt.s32.totalorder %s734_s17, %s734_s17 }
  0x16   :  { %v409_v7 = vsel %vm139_vm2, 1, %v818_v0  ;;  %v410_v9 = vsel %vm140_vm3, 1, %v818_v0  ;;  %vm141_vm4 = vcmp.ne.s32.totalorder %v885_v8, 1  ;;  %vm142_vm5 = vcmp.ne.s32.totalorder %v894_v10, 1  ;;  %v912_v16 = vld [vmem:[%s1482_s1 + $0x38] sm:$0xff]  ;;  %v106_v18 = vld [vmem:[%s1482_s1 + $0x40] sm:$0xff] }
  0x17   :  { %v411_v12 = vsel %vm141_vm4, 1, %v818_v0  ;;  %v108_v14 = vshrl.u32 %v107_v11, 7  ;;  %v412_v15 = vsel %vm142_vm5, 1, %v818_v0  ;;  %vm1485_vm6 = vcmp.ne.s32.totalorder %v903_v13, 1  ;;  %v26_v23 = vld [vmem:[#allocation2] sm:$0xff]  ;;  %s819_s1 = smov 127  }
  0x18   :  { %v413_v19 = vsel %vm1485_vm6, 1, %v818_v0  ;;  %vm144_vm7 = vcmp.ne.s32.totalorder %v912_v16, 1  ;;  %vm145_vm9 = vcmp.ne.s32.totalorder %v106_v18, 1  ;;  %v931_v24 = vld [vmem:[#allocation2 + $0x40] sm:$0xff]  ;;  %v955_v32 = vand.u32 127, %v107_v11  ;;  %v27_v38 = vld [vmem:[#allocation2 + $0x8] sm:$0xff] }
  0x19   :  { %420 = vperm.xlu1 %766, %v408_v4   ;;  %417 = vperm.xlu0 %765, %v407_v5   ;;  %v116_v17 = vadd.s32 64, %v108_v14  ;;  %v414_v20 = vsel %vm144_vm7, 1, %v818_v0  ;;  %v934_v25 = vld [vmem:[#allocation2 + $0x80] sm:$0xff]  ;;  %v28_v41 = vld [vmem:[#allocation2 + $0x10] sm:$0xff]  ;;  %v1486_v42 = vmov 0.0001002004  }
  0x1a   :  { %v936_v26 = vld [vmem:[#allocation2 + $0xc0] sm:$0xff]  ;;  %v958_v33 = vadd.s32 128, %v955_v32  ;;  %v961_v34 = vadd.s32 256, %v955_v32  ;;  %v964_v35 = vadd.s32 384, %v955_v32  ;;  %v967_v36 = vadd.s32 512, %v955_v32  ;;  %v29_v49 = vld [vmem:[#allocation2 + $0x18] sm:$0xff] }
  0x1b   :  { %vm136_vm8 = vcmp.lt.s32.totalorder %v116_v17, 70  ;;  %v940_v27 = vld [vmem:[#allocation2 + $0x100] sm:$0xff]  ;;  %v970_v39 = vadd.s32 640, %v955_v32  ;;  %v973_v40 = vadd.s32 896, %v955_v32  ;;  %v984_v47 = vadd.s32 768, %v955_v32  ;;  %v31_v60 = vld [vmem:[#allocation2 + $0x28] sm:$0xff] }
  0x1c   :  { %vm924_vm10 = vmand %vm136_vm8, %vm145_vm9  ;;  %v942_v28 = vld [vmem:[#allocation2 + $0x140] sm:$0xff]  ;;  %s789_s21 = scalar_lea.vmem %s734_s17, 128 }
  0x1d   :  { %423 = vperm.xlu1 %766, %v409_v7   ;;  %171 = vperm.xlu0 %765, %v863_v3   ;;  %v415_v22 = vsel %vm924_vm10, 1, %v818_v0  ;;  %v946_v29 = vld [vmem:[#allocation2 + $0x180] sm:$0xff]  ;;  %v33_v0 = vld [vmem:[#allocation2 + $0x38] sm:$0xff]  ;;  %p790_p8 = scmp.ne.s32.totalorder %s734_s17, %s789_s21  ;;  %p795_p10 = scmp.lt.s32.totalorder %s789_s21, %s789_s21 }
  0x1e   :  { %v948_v30 = vld [vmem:[#allocation2 + $0x1c0] sm:$0xff] }
  0x1f   :  { %v952_v31 = vld [vmem:[#allocation2 + $0x200] sm:$0xff]  ;;  %p796_p11 = por %p795_p10, %p794_p9 }
  0x20   :  { %v30_v53 = vld [vmem:[#allocation2 + $0x20] sm:$0xff] }
  0x21   :  { %426 = vperm.xlu1 %766, %v410_v9   ;;  %174 = vperm.xlu0 %765, %v877_v6   ;;  %v32_v9 = vld [vmem:[#allocation2 + $0x30] sm:$0xff]  ;;  %p797_p12 = pnand %p796_p11, %p790_p8 }
  0x25   :  { %429 = vperm.xlu1 %766, %v411_v12   ;;  %177 = vperm.xlu0 %765, %v885_v8  }
  0x29   :  { %432 = vperm.xlu1 %766, %v412_v15   ;;  %180 = vperm.xlu0 %765, %v894_v10  }
  0x2d   :  { %435 = vperm.xlu1 %766, %v413_v19   ;;  %183 = vperm.xlu0 %765, %v903_v13  }
  0x31   :  { %438 = vperm.xlu1 %766, %v414_v20   ;;  %186 = vperm.xlu0 %765, %v912_v16  }
  0x35   :  { %441 = vperm.xlu1 %766, %v415_v22   ;;  %189 = vperm.xlu0 %765, %v106_v18  }
  0x39   :  { %623 = vrot.lane.b32.xlu0 %v26_v23, %s819_s1  ;;  %625 = vrot.lane.b32.xlu1 %v931_v24, %s819_s1 }
  0x3d   :  { %627 = vrot.lane.b32.xlu0 %v934_v25, %s819_s1  ;;  %629 = vrot.lane.b32.xlu1 %v936_v26, %s819_s1 }
  0x41   :  { %631 = vrot.lane.b32.xlu0 %v940_v27, %s819_s1  ;;  %633 = vrot.lane.b32.xlu1 %v942_v28, %s819_s1 }
  0x45   :  { %635 = vrot.lane.b32.xlu0 %v946_v29, %s819_s1  ;;  %637 = vrot.lane.b32.xlu1 %v948_v30, %s819_s1 }
  0x49   :  { %639 = vrot.lane.b32.xlu0 %v952_v31, %s819_s1 }
  0x94   :  { %v166_v37 = vpop.permute.xlu0 %165  ;;  %v169_v4 = vpop.permute.xlu1 %168 }
  0x95   :  { %vm191_vm11 = vcmp.eq.s32.totalorder %v955_v32, %v166_v37  ;;  %vm192_vm12 = vcmp.eq.s32.totalorder %v958_v33, %v166_v37  ;;  %vm193_vm13 = vcmp.eq.s32.totalorder %v961_v34, %v166_v37  ;;  %vm194_vm14 = vcmp.eq.s32.totalorder %v964_v35, %v166_v37 }
  0x96   :  { %v263_v43 = vsel %vm191_vm11, 0.9, %v1486_v42  ;;  %v264_v44 = vsel %vm192_vm12, 0.9, %v1486_v42  ;;  %v265_v45 = vsel %vm193_vm13, 0.9, %v1486_v42  ;;  %vm195_vm15 = vcmp.eq.s32.totalorder %v967_v36, %v166_v37 }
  0x97   :  { %v336_v46 = vmul.f32 %v264_v44, %v27_v38  ;;  %v266_v50 = vsel %vm194_vm14, 0.9, %v1486_v42  ;;  %v335_v51 = vmul.f32 %v263_v43, %v26_v23  ;;  %v337_v52 = vmul.f32 %v265_v45, %v28_v41  ;;  %v35_v23 = vld [vmem:[#allocation2 + $0x48] sm:$0xff] }
  0x98   :  { %v418_v48 = vpop.permute.xlu0 %417  ;;  %vm196_vm9 = vcmp.eq.s32.totalorder %v970_v39, %v166_v37  ;;  %v267_v54 = vsel %vm195_vm15, 0.9, %v1486_v42  ;;  %vm198_vm11 = vcmp.eq.s32.totalorder %v973_v40, %v166_v37  ;;  %v338_v56 = vmul.f32 %v266_v50, %v29_v49  ;;  %v421_v43 = vpop.permute.xlu1 %420 }
  0x99   :  { %vm443_vm8 = vcmp.eq.s32.totalorder %v418_v48, 1  ;;  %vm197_vm12 = vcmp.eq.s32.totalorder %v984_v47, %v166_v37  ;;  %v268_v59 = vsel %vm196_vm9, 0.9, %v1486_v42  ;;  %v339_v61 = vmul.f32 %v267_v54, %v30_v53  ;;  %v37_v53 = vld [vmem:[#allocation2 + $0x58] sm:$0xff] }
  0x9a   :  { %v453_v55 = vsel %vm443_vm8, %v336_v46, 0.0  ;;  %v452_v57 = vsel %vm443_vm8, %v335_v51, 0.0  ;;  %v454_v62 = vsel %vm443_vm8, %v337_v52, 0.0  ;;  %v270_v63 = vsel %vm198_vm11, 0.9, %v1486_v42  ;;  %v36_v46 = vld [vmem:[#allocation2 + $0x50] sm:$0xff] }
  0x9b   :  { %v524_v58 = vadd.f32 %v453_v55, %v452_v57  ;;  %v269_v7 = vsel %vm197_vm12, 0.9, %v1486_v42  ;;  %v455_v11 = vsel %vm443_vm8, %v338_v56, 0.0  ;;  %vm199_vm13 = vcmp.eq.s32.totalorder %v955_v32, %v169_v4 }
  0x9c   :  { %v340_v12 = vmul.f32 %v268_v59, %v31_v60  ;;  %v342_v15 = vmul.f32 %v270_v63, %v33_v0  ;;  %v456_v17 = vsel %vm443_vm8, %v339_v61, 0.0  ;;  %vm200_vm14 = vcmp.eq.s32.totalorder %v958_v33, %v169_v4  ;;  %v1013_v56 = vpop.permute.xlu0 %171  ;;  %v1021_v63 = vpop.permute.xlu1 %423  ;;  %v39_v0 = vld [vmem:[#allocation2 + $0x68] sm:$0xff] }
  0x9d   :  { %v525_v5 = vadd.f32 %v524_v58, %v454_v62  ;;  %v341_v18 = vmul.f32 %v269_v7, %v32_v9  ;;  %v271_v20 = vsel %vm199_vm13, 0.9, %v1486_v42  ;;  %vm201_vm15 = vcmp.eq.s32.totalorder %v961_v34, %v169_v4  ;;  %v38_v58 = vld [vmem:[#allocation2 + $0x60] sm:$0xff]  ;;  %v41_v9 = vld [vmem:[#allocation2 + $0x78] sm:$0xff] }
  0x9e   :  { %v457_v22 = vsel %vm443_vm8, %v340_v12, 0.0  ;;  %v272_v37 = vsel %vm200_vm14, 0.9, %v1486_v42  ;;  %vm530_vm9 = vcmask 850944   ;;  %v459_v38 = vsel %vm443_vm8, %v342_v15, 0.0  ;;  %v40_v15 = vld [vmem:[#allocation2 + $0x70] sm:$0xff] }
  0x9f   :  { %v526_v14 = vadd.f32 %v525_v5, %v455_v11  ;;  %vm202_vm11 = vcmp.eq.s32.totalorder %v964_v35, %v169_v4  ;;  %v343_v44 = vmul.f32 %v271_v20, %v931_v24  ;;  %v458_v45 = vsel %vm443_vm8, %v341_v18, 0.0 }
  0xa0   :  { %vm444_vm12 = vcmp.eq.s32.totalorder %v421_v43, 1  ;;  %v273_v49 = vsel %vm201_vm15, 0.9, %v1486_v42  ;;  %v344_v51 = vmul.f32 %v272_v37, %v35_v23  ;;  %v531_v52 = vsel %vm530_vm9, %v459_v38, 0.0  ;;  %v1027_v18 = vpop.permute.xlu0 %174 }
  0xa1   :  { %v527_v19 = vadd.f32 %v526_v14, %v456_v17  ;;  %vm203_vm13 = vcmp.eq.s32.totalorder %v967_v36, %v169_v4  ;;  %v274_v54 = vsel %vm202_vm11, 0.9, %v1486_v42  ;;  %v345_v57 = vmul.f32 %v273_v49, %v36_v46  ;;  %v43_v46 = vld [vmem:[#allocation2 + $0x88] sm:$0xff] }
  0xa2   :  { %v460_v24 = vsel %vm444_vm12, %v343_v44, 0.0  ;;  %vm204_vm8 = vcmp.eq.s32.totalorder %v970_v39, %v169_v4  ;;  %vm206_vm14 = vcmp.eq.s32.totalorder %v973_v40, %v169_v4  ;;  %v275_v59 = vsel %vm203_vm13, 0.9, %v1486_v42  ;;  %v1036_v44 = vpop.permute.xlu1 %426 }
  0xa3   :  { %v528_v41 = vadd.f32 %v527_v19, %v457_v22  ;;  %v346_v60 = vmul.f32 %v274_v54, %v37_v53  ;;  %v461_v61 = vsel %vm444_vm12, %v344_v51, 0.0  ;;  %vm205_vm15 = vcmp.eq.s32.totalorder %v984_v47, %v169_v4 }
  0xa4   :  { %v276_v5 = vsel %vm204_vm8, 0.9, %v1486_v42  ;;  %v462_v7 = vsel %vm444_vm12, %v345_v57, 0.0  ;;  %v278_v11 = vsel %vm206_vm14, 0.9, %v1486_v42  ;;  %v347_v12 = vmul.f32 %v275_v59, %v38_v58  ;;  %v45_v59 = vld [vmem:[#allocation2 + $0x98] sm:$0xff] }
  0xa5   :  { %v529_v50 = vadd.f32 %v528_v41, %v458_v45  ;;  %v277_v17 = vsel %vm205_vm15, 0.9, %v1486_v42  ;;  %v463_v4 = vsel %vm444_vm12, %v346_v60, 0.0  ;;  %vm207_vm11 = vcmp.eq.s32.totalorder %v955_v32, %v1013_v56 }
  0xa6   :  { %v348_v19 = vmul.f32 %v276_v5, %v39_v0  ;;  %v350_v22 = vmul.f32 %v278_v11, %v41_v9  ;;  %vm208_vm13 = vcmp.eq.s32.totalorder %v958_v33, %v1013_v56  ;;  %v349_v23 = vmul.f32 %v277_v17, %v40_v15  ;;  %v46_v0 = vld [vmem:[#allocation2 + $0xa0] sm:$0xff] }
  0xa7   :  { %v532_v55 = vadd.f32 %v531_v52, %v529_v50  ;;  %v464_v37 = vsel %vm444_vm12, %v347_v12, 0.0  ;;  %v279_v38 = vsel %vm207_vm11, 0.9, %v1486_v42  ;;  %vm209_vm8 = vcmp.eq.s32.totalorder %v961_v34, %v1013_v56  ;;  %v1043_v52 = vpop.permute.xlu0 %177 }
  0xa8   :  { %v465_v45 = vsel %vm444_vm12, %v348_v19, 0.0  ;;  %v280_v49 = vsel %vm208_vm13, 0.9, %v1486_v42  ;;  %v467_v50 = vsel %vm444_vm12, %v350_v22, 0.0  ;;  %vm210_vm14 = vcmp.eq.s32.totalorder %v964_v35, %v1013_v56 }
  0xa9   :  { %v533_v48 = vadd.f32 %v532_v55, %v460_v24  ;;  %v351_v53 = vmul.f32 %v279_v38, %v934_v25  ;;  %v466_v54 = vsel %vm444_vm12, %v349_v23, 0.0  ;;  %vm445_vm15 = vcmp.eq.s32.totalorder %v1021_v63, 1  ;;  %v44_v55 = vld [vmem:[#allocation2 + $0x90] sm:$0xff] }
  0xaa   :  { %v281_v57 = vsel %vm209_vm8, 0.9, %v1486_v42  ;;  %vm211_vm11 = vcmp.eq.s32.totalorder %v967_v36, %v1013_v56  ;;  %v540_v58 = vsel %vm530_vm9, %v467_v50, 0.0  ;;  %v282_v60 = vsel %vm210_vm14, 0.9, %v1486_v42 }
  0xab   :  { %v534_v62 = vadd.f32 %v533_v48, %v461_v61  ;;  %v352_v48 = vmul.f32 %v280_v49, %v43_v46  ;;  %vm212_vm12 = vcmp.eq.s32.totalorder %v970_v39, %v1013_v56  ;;  %v353_v25 = vmul.f32 %v281_v57, %v44_v55  ;;  %v1064_v9 = vpop.permute.xlu0 %180 }
  0xac   :  { %v468_v43 = vsel %vm445_vm15, %v351_v53, 0.0  ;;  %vm214_vm13 = vcmp.eq.s32.totalorder %v973_v40, %v1013_v56  ;;  %v283_v5 = vsel %vm211_vm11, 0.9, %v1486_v42  ;;  %vm213_vm8 = vcmp.eq.s32.totalorder %v984_v47, %v1013_v56 }
  0xad   :  { %v535_v14 = vadd.f32 %v534_v62, %v462_v7  ;;  %v1055_v62 = vpop.permute.xlu1 %429  ;;  %v354_v11 = vmul.f32 %v282_v60, %v45_v59  ;;  %v469_v12 = vsel %vm445_vm15, %v352_v48, 0.0  ;;  %v284_v15 = vsel %vm212_vm12, 0.9, %v1486_v42 }
  0xae   :  { %v286_v19 = vsel %vm214_vm13, 0.9, %v1486_v42  ;;  %v470_v22 = vsel %vm445_vm15, %v353_v25, 0.0  ;;  %v285_v23 = vsel %vm213_vm8, 0.9, %v1486_v42  ;;  %vm215_vm14 = vcmp.eq.s32.totalorder %v955_v32, %v1027_v18 }
  0xaf   :  { %v536_v20 = vadd.f32 %v535_v14, %v463_v4  ;;  %v47_v14 = vld [vmem:[#allocation2 + $0xa8] sm:$0xff]  ;;  %v49_v4 = vld [vmem:[#allocation2 + $0xb8] sm:$0xff]  ;;  %v1081_v50 = vpop.permute.xlu0 %183  ;;  %vm216_vm11 = vcmp.eq.s32.totalorder %v958_v33, %v1027_v18  ;;  %v287_v55 = vsel %vm215_vm14, 0.9, %v1486_v42  ;;  %v821_v57 = vmov 0.0  }
  0xb0   :  { %v358_v46 = vmul.f32 %v286_v19, %v49_v4  ;;  %vm217_vm12 = vcmp.eq.s32.totalorder %v961_v34, %v1027_v18  ;;  %v288_v25 = vsel %vm216_vm11, 0.9, %v1486_v42  ;;  %vm659_vm13 = vcmask 7168  }
  0xb1   :  { %v537_v41 = vadd.f32 %v536_v20, %v464_v37  ;;  %v355_v20 = vmul.f32 %v283_v5, %v46_v0  ;;  %v48_v37 = vld [vmem:[#allocation2 + $0xb0] sm:$0xff]  ;;  %v1075_v56 = vpop.permute.xlu1 %432  ;;  %vm218_vm8 = vcmp.eq.s32.totalorder %v964_v35, %v1027_v18  ;;  %v359_v5 = vmul.f32 %v287_v55, %v936_v26 }
  0xb2   :  { %v475_v59 = vsel %vm445_vm15, %v358_v46, 0.0  ;;  %vm446_vm14 = vcmp.eq.s32.totalorder %v1036_v44, 1  ;;  %v744_v26 = vsel %vm139_vm2, 1.0, %v821_v57  ;;  %vm220_vm11 = vcmp.eq.s32.totalorder %v970_v39, %v1027_v18 }
  0xb3   :  { %v538_v51 = vadd.f32 %v537_v41, %v465_v45  ;;  %v356_v41 = vmul.f32 %v284_v15, %v47_v14  ;;  %v471_v45 = vsel %vm445_vm15, %v354_v11, 0.0  ;;  %v472_v53 = vsel %vm445_vm15, %v355_v20, 0.0  ;;  %v1111_v15 = vpop.permute.xlu0 %186  ;;  %v53_v20 = vld [vmem:[#allocation2 + $0xd8] sm:$0xff] }
  0xb4   :  { %v289_v14 = vsel %vm217_vm12, 0.9, %v1486_v42  ;;  %v549_v63 = vsel %vm530_vm9, %v475_v59, 0.0  ;;  %vm221_vm12 = vcmp.eq.s32.totalorder %v984_v47, %v1027_v18 }
  0xb5   :  { %v539_v24 = vadd.f32 %v538_v51, %v466_v54  ;;  %v357_v51 = vmul.f32 %v285_v23, %v48_v37  ;;  %v473_v48 = vsel %vm445_vm15, %v356_v41, 0.0  ;;  %v476_v37 = vsel %vm446_vm14, %v359_v5, 0.0  ;;  %v54_v41 = vld [vmem:[#allocation2 + $0xe0] sm:$0xff] }
  0xb6   :  { %v293_v59 = vsel %vm221_vm12, 0.9, %v1486_v42  ;;  %vm227_vm12 = vcmp.eq.s32.totalorder %v967_v36, %v1043_v52 }
  0xb7   :  { %v541_v61 = vadd.f32 %v540_v58, %v539_v24  ;;  %v743_v24 = vsel %vm1484_vm0, 1.0, %v821_v57  ;;  %v742_v58 = vsel %vm137_vm1, 1.0, %v821_v57  ;;  %v474_v0 = vsel %vm445_vm15, %v357_v51, 0.0 }
  0xb8   :  { %vm219_vm15 = vcmp.eq.s32.totalorder %v967_v36, %v1027_v18  ;;  %vm222_vm0 = vcmp.eq.s32.totalorder %v973_v40, %v1027_v18  ;;  %v700_v51 = vsel %vm659_vm13, %v744_v26, 0.0 }
  0xb9   :  { %v542_v7 = vadd.f32 %v541_v61, %v468_v43  ;;  %v51_v61 = vld [vmem:[#allocation2 + $0xc8] sm:$0xff]  ;;  %v1101_v43 = vpop.permute.xlu1 %435  ;;  %v294_v5 = vsel %vm222_vm0, 0.9, %v1486_v42  ;;  %vm223_vm0 = vcmp.eq.s32.totalorder %v955_v32, %v1043_v52 }
  0xba   :  { %v360_v4 = vmul.f32 %v288_v25, %v51_v61  ;;  %v1146_v61 = vpop.permute.xlu0 %189  ;;  %v746_v25 = vsel %vm141_vm4, 1.0, %v821_v57 }
  0xbb   :  { %v543_v17 = vadd.f32 %v542_v7, %v469_v12  ;;  %v698_v7 = vsel %vm659_vm13, %v743_v24, 0.0  ;;  %v52_v12 = vld [vmem:[#allocation2 + $0xd0] sm:$0xff]  ;;  %v55_v24 = vld [vmem:[#allocation2 + $0xe8] sm:$0xff] }
  0xbc   :  { %v361_v23 = vmul.f32 %v289_v14, %v52_v12  ;;  %v477_v55 = vsel %vm446_vm14, %v360_v4, 0.0 }
  0xbd   :  { %v544_v38 = vadd.f32 %v543_v17, %v470_v22  ;;  %v697_v17 = vsel %vm659_vm13, %v742_v58, 0.0  ;;  %v290_v22 = vsel %vm218_vm8, 0.9, %v1486_v42  ;;  %v292_v58 = vsel %vm220_vm11, 0.9, %v1486_v42 }
  0xbe   :  { %v364_v4 = vmul.f32 %v292_v58, %v55_v24  ;;  %vm224_vm8 = vcmp.eq.s32.totalorder %v958_v33, %v1043_v52  ;;  %v59_v58 = vld [vmem:[#allocation2 + $0x108] sm:$0xff]  ;;  %vm226_vm11 = vcmp.eq.s32.totalorder %v964_v35, %v1043_v52 }
  0xbf   :  { %v545_v49 = vadd.f32 %v544_v38, %v471_v45  ;;  %v699_v38 = vadd.f32 %v698_v7, %v697_v17  ;;  %v291_v45 = vsel %vm219_vm15, 0.9, %v1486_v42  ;;  %v747_v17 = vsel %vm142_vm5, 1.0, %v821_v57 }
  0xc0   :  { %v363_v7 = vmul.f32 %v291_v45, %v54_v41  ;;  %v706_v45 = vsel %vm659_vm13, %v747_v17, 0.0  ;;  %vm225_vm15 = vcmp.eq.s32.totalorder %v961_v34, %v1043_v52 }
  0xc1   :  { %v546_v54 = vadd.f32 %v545_v49, %v472_v53  ;;  %v1130_v49 = vpop.permute.xlu1 %438  ;;  %v745_v53 = vsel %vm140_vm3, 1.0, %v821_v57  ;;  %v701_v12 = vadd.f32 %v700_v51, %v699_v38  ;;  %v295_v51 = vsel %vm223_vm0, 0.9, %v1486_v42 }
  0xc2   :  { %v702_v14 = vsel %vm659_vm13, %v745_v53, 0.0  ;;  %v480_v38 = vsel %vm446_vm14, %v363_v7, 0.0  ;;  %v748_v53 = vsel %vm1485_vm6, 1.0, %v821_v57  ;;  %vm228_vm0 = vcmp.eq.s32.totalorder %v970_v39, %v1043_v52  ;;  %v61_v7 = vld [vmem:[#allocation2 + $0x118] sm:$0xff] }
  0xc3   :  { %v547_v60 = vadd.f32 %v546_v54, %v473_v48  ;;  %v362_v54 = vmul.f32 %v290_v22, %v53_v20  ;;  %v56_v48 = vld [vmem:[#allocation2 + $0xf0] sm:$0xff]  ;;  %v703_v41 = vadd.f32 %v702_v14, %v701_v12  ;;  %vm229_vm6 = vcmp.eq.s32.totalorder %v984_v47, %v1043_v52 }
  0xc4   :  { %v365_v26 = vmul.f32 %v293_v59, %v56_v48  ;;  %v296_v59 = vsel %vm224_vm8, 0.9, %v1486_v42  ;;  %v367_v44 = vmul.f32 %v295_v51, %v940_v27  ;;  %v297_v12 = vsel %vm225_vm15, 0.9, %v1486_v42  ;;  %v64_v27 = vld [vmem:[#allocation2 + $0x130] sm:$0xff] }
  0xc5   :  { %v548_v11 = vadd.f32 %v547_v60, %v474_v0  ;;  %v57_v0 = vld [vmem:[#allocation2 + $0xf8] sm:$0xff]  ;;  %v1165_v22 = vpop.permute.xlu1 %441  ;;  %vm447_vm8 = vcmp.eq.s32.totalorder %v1055_v62, 1  ;;  %vm232_vm15 = vcmp.eq.s32.totalorder %v958_v33, %v1064_v9 }
  0xc6   :  { %v366_v18 = vmul.f32 %v294_v5, %v57_v0  ;;  %1491 = vst [vmem:[#allocation8_spill] sm:$0xff] %v1165_v22  ;;  %v60_v5 = vld [vmem:[#allocation2 + $0x110] sm:$0xff]  ;;  %v484_v51 = vsel %vm447_vm8, %v367_v44, 0.0 }
  0xc7   :  { %v550_v19 = vadd.f32 %v549_v63, %v548_v11  ;;  %v478_v11 = vsel %vm446_vm14, %v361_v23, 0.0  ;;  %v1167_v23 = vpop.permute.xlu0 %623 }
  0xc8   :  { %v483_v24 = vsel %vm446_vm14, %v366_v18, 0.0  ;;  %v299_v18 = vsel %vm227_vm12, 0.9, %v1486_v42  ;;  %vm448_vm12 = vcmp.eq.s32.totalorder %v1075_v56, 1  ;;  %v77_v56 = vld [vmem:[#allocation2 + $0x198] sm:$0xff] }
  0xc9   :  { %v551_v46 = vadd.f32 %v550_v19, %v476_v37  ;;  %v479_v19 = vsel %vm446_vm14, %v362_v54, 0.0  ;;  %v704_v37 = vsel %vm659_vm13, %v746_v25, 0.0  ;;  %v481_v54 = vsel %vm446_vm14, %v364_v4, 0.0 }
  0xca   :  { %v705_v25 = vadd.f32 %v704_v37, %v703_v41  ;;  %v558_v17 = vsel %vm530_vm9, %v483_v24, 0.0  ;;  %v298_v4 = vsel %vm226_vm11, 0.9, %v1486_v42  ;;  %v301_v37 = vsel %vm229_vm6, 0.9, %v1486_v42 }
  0xcb   :  { %v552_v60 = vadd.f32 %v551_v46, %v477_v55  ;;  %v482_v55 = vsel %vm446_vm14, %v365_v26, 0.0  ;;  %vm230_vm14 = vcmp.eq.s32.totalorder %v973_v40, %v1043_v52  ;;  %v628_v14 = vpop.permute.xlu0 %627  ;;  %v368_v26 = vmul.f32 %v296_v59, %v59_v58 }
  0xcc   :  { %v302_v41 = vsel %vm230_vm14, 0.9, %v1486_v42  ;;  %v707_v58 = vadd.f32 %v706_v45, %v705_v25  ;;  %v708_v59 = vsel %vm659_vm13, %v748_v53, 0.0  ;;  %vm231_vm6 = vcmp.eq.s32.totalorder %v955_v32, %v1064_v9 }
  0xcd   :  { %v553_v63 = vadd.f32 %v552_v60, %v478_v11  ;;  %v626_v60 = vpop.permute.xlu1 %625  ;;  %v62_v11 = vld [vmem:[#allocation2 + $0x120] sm:$0xff]  ;;  %vm1493_vm11 = vcmp.ne.s32.totalorder %v853_v1, 1  ;;  %vm238_vm14 = vcmp.eq.s32.totalorder %v973_v40, %v1064_v9 }
  0xcf   :  { %v554_v20 = vadd.f32 %v553_v63, %v479_v19  ;;  %v63_v63 = vld [vmem:[#allocation2 + $0x128] sm:$0xff]  ;;  %v632_v22 = vpop.permute.xlu0 %631 }
  0xd0   :  { %v654_v2 = vsel %vm141_vm4, %v632_v22, 0.0  ;;  %vm236_vm4 = vcmp.eq.s32.totalorder %v970_v39, %v1064_v9 }
  0xd1   :  { %v555_v46 = vadd.f32 %v554_v20, %v480_v38  ;;  %v300_v20 = vsel %vm228_vm0, 0.9, %v1486_v42  ;;  %v65_v38 = vld [vmem:[#allocation2 + $0x138] sm:$0xff]  ;;  %v485_v42 = vsel %vm447_vm8, %v368_v26, 0.0  ;;  %v1492_v26 = vmov 0.0001002004  }
  0xd2   :  { %v372_v52 = vmul.f32 %v300_v20, %v63_v63  ;;  %v650_v20 = vsel %vm137_vm1, %v1167_v23, 0.0  ;;  %vm233_vm1 = vcmp.eq.s32.totalorder %v961_v34, %v1064_v9  ;;  %v67_v23 = vld [vmem:[#allocation2 + $0x148] sm:$0xff]  ;;  %vm1494_vm0 = vcmp.ne.s32.totalorder %v903_v13, 1 }
  0xd3   :  { %v556_v48 = vadd.f32 %v555_v46, %v481_v54  ;;  %v369_v46 = vmul.f32 %v297_v12, %v60_v5  ;;  %v749_v54 = vsel %vm144_vm7, 1.0, %v821_v57  ;;  %v374_v5 = vmul.f32 %v302_v41, %v65_v38 }
  0xd4   :  { %v1237_v45 = vsel %vm659_vm13, %v749_v54, 0.0  ;;  %v652_v38 = vsel %vm139_vm2, %v628_v14, 0.0  ;;  %vm234_vm2 = vcmp.eq.s32.totalorder %v964_v35, %v1064_v9 }
  0xd5   :  { %v557_v0 = vadd.f32 %v556_v48, %v482_v55  ;;  %v370_v55 = vmul.f32 %v298_v4, %v61_v7  ;;  %v630_v48 = vpop.permute.xlu1 %629  ;;  %v486_v44 = vsel %vm447_vm8, %v369_v46, 0.0  ;;  %v1234_v4 = vadd.f32 %v708_v59, %v707_v58  ;;  %v68_v58 = vld [vmem:[#allocation2 + $0x150] sm:$0xff] }
  0xd6   :  { %v491_v63 = vsel %vm447_vm8, %v374_v5, 0.0  ;;  %v653_v62 = vsel %vm140_vm3, %v630_v48, 0.0  ;;  %v660_v46 = vsel %vm659_vm13, %v650_v20, 0.0  ;;  %v663_v54 = vsel %vm659_vm13, %v652_v38, 0.0 }
  0xd7   :  { %v559_v19 = vadd.f32 %v558_v17, %v557_v0  ;;  %v371_v0 = vmul.f32 %v299_v18, %v62_v11  ;;  %v373_v17 = vmul.f32 %v301_v37, %v64_v27  ;;  %v487_v53 = vsel %vm447_vm8, %v370_v55, 0.0  ;;  %v636_v55 = vpop.permute.xlu0 %635 }
  0xd8   :  { %v651_v37 = vsel %vm1493_vm11, %v626_v60, 0.0  ;;  %v567_v6 = vsel %vm530_vm9, %v491_v63, 0.0  ;;  %v304_v60 = vsel %vm232_vm15, 0.9, %v1492_v26  ;;  %v665_v14 = vsel %vm659_vm13, %v653_v62, 0.0  ;;  %v70_v63 = vld [vmem:[#allocation2 + $0x160] sm:$0xff] }
  0xd9   :  { %v560_v24 = vadd.f32 %v559_v19, %v484_v51  ;;  %v488_v25 = vsel %vm447_vm8, %v371_v0, 0.0  ;;  %v490_v11 = vsel %vm447_vm8, %v373_v17, 0.0  ;;  %v303_v19 = vsel %vm231_vm6, 0.9, %v1492_v26  ;;  %v634_v18 = vpop.permute.xlu1 %633  ;;  %v71_v62 = vld [vmem:[#allocation2 + $0x168] sm:$0xff] }
  0xda   :  { %v661_v51 = vsel %vm659_vm13, %v651_v37, 0.0  ;;  %v655_v8 = vsel %vm142_vm5, %v634_v18, 0.0  ;;  %vm235_vm3 = vcmp.eq.s32.totalorder %v967_v36, %v1064_v9  ;;  %v305_v59 = vsel %vm233_vm1, 0.9, %v1492_v26 }
  0xdb   :  { %v561_v12 = vadd.f32 %v560_v24, %v485_v42  ;;  %v489_v42 = vsel %vm447_vm8, %v372_v52, 0.0  ;;  %v662_v1 = vadd.f32 %v661_v51, %v660_v46  ;;  %v375_v24 = vmul.f32 %v303_v19, %v942_v28 }
  0xdc   :  { %v667_v0 = vsel %vm659_vm13, %v654_v2, 0.0  ;;  %v376_v17 = vmul.f32 %v304_v60, %v67_v23  ;;  %v656_v28 = vsel %vm1494_vm0, %v636_v55, 0.0  ;;  %vm237_vm5 = vcmp.eq.s32.totalorder %v984_v47, %v1064_v9  ;;  %v73_v55 = vld [vmem:[#allocation2 + $0x178] sm:$0xff]  ;;  %v72_v23 = vld [vmem:[#allocation2 + $0x170] sm:$0xff] }
  0xdd   :  { %v562_v7 = vadd.f32 %v561_v12, %v486_v44  ;;  %v664_v48 = vadd.f32 %v663_v54, %v662_v1  ;;  %v638_v52 = vpop.permute.xlu1 %637  ;;  %v69_v12 = vld [vmem:[#allocation2 + $0x158] sm:$0xff]  ;;  %v306_v44 = vsel %vm234_vm2, 0.9, %v1492_v26  ;;  %v671_v18 = vsel %vm659_vm13, %v656_v28, 0.0 }
  0xde   :  { %v657_v13 = vsel %vm144_vm7, %v638_v52, 0.0  ;;  %v378_v20 = vmul.f32 %v306_v44, %v69_v12  ;;  %v493_v37 = vsel %vm448_vm12, %v376_v17, 0.0  ;;  %v750_v54 = vsel %vm924_vm10, 1.0, %v821_v57  ;;  %v75_v12 = vld [vmem:[#allocation2 + $0x188] sm:$0xff] }
  0xdf   :  { %v563_v27 = vadd.f32 %v562_v7, %v487_v53  ;;  %v666_v5 = vadd.f32 %v665_v14, %v664_v48  ;;  %v669_v7 = vsel %vm659_vm13, %v655_v8, 0.0  ;;  %v640_v53 = vpop.permute.xlu0 %639  ;;  %v673_v51 = vsel %vm659_vm13, %v657_v13, 0.0 }
  0xe0   :  { %v658_v16 = vsel %vm924_vm10, %v640_v53, 0.0  ;;  %v310_v1 = vsel %vm238_vm14, 0.9, %v1492_v26  ;;  %v309_v60 = vsel %vm237_vm5, 0.9, %v1492_v26  ;;  %v711_v21 = vadd.f32 %v1237_v45, %v1234_v4 }
  0xe1   :  { %v564_v41 = vadd.f32 %v563_v27, %v488_v25  ;;  %v377_v25 = vmul.f32 %v305_v59, %v68_v58  ;;  %v307_v27 = vsel %vm235_vm3, 0.9, %v1492_v26  ;;  %v495_v48 = vsel %vm448_vm12, %v378_v20, 0.0  ;;  %v78_v20 = vld [vmem:[#allocation2 + $0x1a0] sm:$0xff] }
  0xe2   :  { %v379_v2 = vmul.f32 %v307_v27, %v70_v63  ;;  %vm239_vm7 = vcmp.eq.s32.totalorder %v955_v32, %v1081_v50  ;;  %v712_v59 = vsel %vm659_vm13, %v750_v54, 0.0  ;;  %v381_v9 = vmul.f32 %v309_v60, %v72_v23  ;;  %v81_v54 = vld [vmem:[#allocation2 + $0x1b8] sm:$0xff] }
  0xe3   :  { %v565_v3 = vadd.f32 %v564_v41, %v489_v42  ;;  %v492_v42 = vsel %vm448_vm12, %v375_v24, 0.0  ;;  %v308_v41 = vsel %vm236_vm4, 0.9, %v1492_v26  ;;  %v675_v24 = vsel %vm659_vm13, %v658_v16, 0.0 }
  0xe4   :  { %v380_v57 = vmul.f32 %v308_v41, %v71_v62  ;;  %vm240_vm10 = vcmp.eq.s32.totalorder %v958_v33, %v1081_v50  ;;  %v311_v52 = vsel %vm239_vm7, 0.9, %v1492_v26  ;;  %vm241_vm8 = vcmp.eq.s32.totalorder %v961_v34, %v1081_v50  ;;  %v79_v41 = vld [vmem:[#allocation2 + $0x1a8] sm:$0xff] }
  0xe5   :  { %v566_v22 = vadd.f32 %v565_v3, %v490_v11  ;;  %v668_v11 = vadd.f32 %v667_v0, %v666_v5  ;;  %v494_v3 = vsel %vm448_vm12, %v377_v25, 0.0  ;;  %v496_v0 = vsel %vm448_vm12, %v379_v2, 0.0 }
  0xe6   :  { %v497_v17 = vsel %vm448_vm12, %v380_v57, 0.0  ;;  %v713_v5 = vadd.f32 %v712_v59, %v711_v21  ;;  %v312_v44 = vsel %vm240_vm10, 0.9, %v1492_v26  ;;  %vm242_vm13 = vcmp.eq.s32.totalorder %v964_v35, %v1081_v50 }
  0xe7   :  { %v568_v10 = vadd.f32 %v567_v6, %v566_v22  ;;  %v670_v38 = vadd.f32 %v669_v7, %v668_v11  ;;  %v382_v22 = vmul.f32 %v310_v1, %v73_v55  ;;  %v498_v7 = vsel %vm448_vm12, %v381_v9, 0.0  ;;  %v83_v9 = vld [vmem:[#allocation2 + $0x1c8] sm:$0xff] }
  0xe8   :  { %v383_v53 = vmul.f32 %v311_v52, %v946_v29  ;;  %v313_v11 = vsel %vm241_vm8, 0.9, %v1492_v26  ;;  %vm243_vm6 = vcmp.eq.s32.totalorder %v967_v36, %v1081_v50  ;;  %v384_v63 = vmul.f32 %v312_v44, %v75_v12 }
  0xe9   :  { %v569_v19 = vadd.f32 %v568_v10, %v492_v42  ;;  %v672_v6 = vadd.f32 %v671_v18, %v670_v38  ;;  %v499_v28 = vsel %vm448_vm12, %v382_v22, 0.0  ;;  %v76_v42 = vld [vmem:[#allocation2 + $0x190] sm:$0xff]  ;;  %vm449_vm15 = vcmp.eq.s32.totalorder %v1101_v43, 1  ;;  %v85_v43 = vld [vmem:[#allocation2 + $0x1d8] sm:$0xff] }
  0xea   :  { %v576_v13 = vsel %vm530_vm9, %v499_v28, 0.0  ;;  %vm244_vm11 = vcmp.eq.s32.totalorder %v970_v39, %v1081_v50  ;;  %v385_v29 = vmul.f32 %v313_v11, %v76_v42  ;;  %v500_v18 = vsel %vm449_vm15, %v383_v53, 0.0  ;;  %v86_v53 = vld [vmem:[#allocation2 + $0x1e0] sm:$0xff] }
  0xeb   :  { %v570_v46 = vadd.f32 %v569_v19, %v493_v37  ;;  %v674_v8 = vadd.f32 %v673_v51, %v672_v6  ;;  %v314_v19 = vsel %vm242_vm13, 0.9, %v1492_v26  ;;  %vm246_vm12 = vcmp.eq.s32.totalorder %v973_v40, %v1081_v50 }
  0xec   :  { %v315_v37 = vsel %vm243_vm6, 0.9, %v1492_v26  ;;  %vm245_vm1 = vcmp.eq.s32.totalorder %v984_v47, %v1081_v50  ;;  %v386_v16 = vmul.f32 %v314_v19, %v77_v56  ;;  %v501_v62 = vsel %vm449_vm15, %v384_v63, 0.0  ;;  %v87_v63 = vld [vmem:[#allocation2 + $0x1e8] sm:$0xff] }
  0xed   :  { %v571_v14 = vadd.f32 %v570_v46, %v494_v3  ;;  %v676_v4 = vadd.f32 %v675_v24, %v674_v8  ;;  %v316_v46 = vsel %vm244_vm11, 0.9, %v1492_v26  ;;  %v318_v55 = vsel %vm246_vm12, 0.9, %v1492_v26  ;;  %v80_v3 = vld [vmem:[#allocation2 + $0x1b0] sm:$0xff] }
  0xee   :  { %v387_v1 = vmul.f32 %v315_v37, %v78_v20  ;;  %v502_v2 = vsel %vm449_vm15, %v385_v29, 0.0  ;;  %v317_v6 = vsel %vm245_vm1, 0.9, %v1492_v26  ;;  %v388_v50 = vmul.f32 %v316_v46, %v79_v41  ;;  %v89_v20 = vld [vmem:[#allocation2 + $0x1f8] sm:$0xff]  ;;  %v88_v37 = vld [vmem:[#allocation2 + $0x1f0] sm:$0xff] }
  0xef   :  { %v572_v58 = vadd.f32 %v571_v14, %v495_v48  ;;  %677 = vadd.xlane.f32.xlu0 %v676_v4  ;;  %v503_v60 = vsel %vm449_vm15, %v386_v16, 0.0  ;;  %vm247_vm2 = vcmp.eq.s32.totalorder %v955_v32, %v1111_v15  ;;  %v390_v14 = vmul.f32 %v318_v55, %v81_v54 }
  0xf0   :  { %v389_v21 = vmul.f32 %v317_v6, %v80_v3  ;;  %v504_v57 = vsel %vm449_vm15, %v387_v1, 0.0  ;;  %vm248_vm3 = vcmp.eq.s32.totalorder %v958_v33, %v1111_v15  ;;  %v319_v8 = vsel %vm247_vm2, 0.9, %v1492_v26  ;;  %v91_v3 = vld [vmem:[#allocation2 + $0x208] sm:$0xff] }
  0xf1   :  { %v573_v45 = vadd.f32 %v572_v58, %v496_v0  ;;  %v505_v22 = vsel %vm449_vm15, %v388_v50, 0.0  ;;  %vm249_vm4 = vcmp.eq.s32.totalorder %v961_v34, %v1111_v15  ;;  %v507_v58 = vsel %vm449_vm15, %v390_v14, 0.0 }
  0xf2   :  { %v320_v0 = vsel %vm248_vm3, 0.9, %v1492_v26  ;;  %v506_v4 = vsel %vm449_vm15, %v389_v21, 0.0  ;;  %vm250_vm0 = vcmp.eq.s32.totalorder %v964_v35, %v1111_v15  ;;  %v585_v28 = vsel %vm530_vm9, %v507_v58, 0.0 }
  0xf3   :  { %v574_v10 = vadd.f32 %v573_v45, %v497_v17  ;;  %714 = vadd.xlane.f32.xlu0 %v713_v5  ;;  %v391_v45 = vmul.f32 %v319_v8, %v948_v30  ;;  %v84_v17 = vld [vmem:[#allocation2 + $0x1d0] sm:$0xff]  ;;  %v321_v5 = vsel %vm249_vm4, 0.9, %v1492_v26  ;;  %vm251_vm5 = vcmp.eq.s32.totalorder %v967_v36, %v1111_v15 }
  0xf4   :  { %vm450_vm14 = vcmp.eq.s32.totalorder %v1130_v49, 1  ;;  %v322_v44 = vsel %vm250_vm0, 0.9, %v1492_v26  ;;  %vm252_vm7 = vcmp.eq.s32.totalorder %v970_v39, %v1111_v15  ;;  %v393_v30 = vmul.f32 %v321_v5, %v84_v17  ;;  %v96_v5 = vld [vmem:[#allocation2 + $0x230] sm:$0xff] }
  0xf5   :  { %v575_v25 = vadd.f32 %v574_v10, %v498_v7  ;;  %v392_v10 = vmul.f32 %v320_v0, %v83_v9  ;;  %v508_v7 = vsel %vm450_vm14, %v391_v45, 0.0  ;;  %vm254_vm10 = vcmp.eq.s32.totalorder %v973_v40, %v1111_v15  ;;  %v95_v0 = vld [vmem:[#allocation2 + $0x228] sm:$0xff]  ;;  %v97_v45 = vld [vmem:[#allocation2 + $0x238] sm:$0xff] }
  0xf6   :  { %vm253_vm8 = vcmp.eq.s32.totalorder %v984_v47, %v1111_v15  ;;  %v394_v11 = vmul.f32 %v322_v44, %v85_v43  ;;  %v326_v19 = vsel %vm254_vm10, 0.9, %v1492_v26  ;;  %vm255_vm13 = vcmp.eq.s32.totalorder %v955_v32, %v1146_v61 }
  0xf7   :  { %v577_v27 = vadd.f32 %v576_v13, %v575_v25  ;;  %v323_v25 = vsel %vm251_vm5, 0.9, %v1492_v26  ;;  %v509_v13 = vsel %vm450_vm14, %v392_v10, 0.0  ;;  %v398_v46 = vmul.f32 %v326_v19, %v89_v20 }
  0xf8   :  { %v395_v29 = vmul.f32 %v323_v25, %v86_v53  ;;  %vm256_vm6 = vcmp.eq.s32.totalorder %v958_v33, %v1146_v61  ;;  %v327_v55 = vsel %vm255_vm13, 0.9, %v1492_v26  ;;  %vm257_vm15 = vcmp.eq.s32.totalorder %v961_v34, %v1146_v61 }
  0xf9   :  { %v578_v38 = vadd.f32 %v577_v27, %v500_v18  ;;  %v324_v27 = vsel %vm252_vm7, 0.9, %v1492_v26  ;;  %v510_v18 = vsel %vm450_vm14, %v393_v30, 0.0  ;;  %v328_v32 = vsel %vm256_vm6, 0.9, %v1492_v26 }
  0xfa   :  { %v396_v15 = vmul.f32 %v324_v27, %v87_v63  ;;  %v512_v54 = vsel %vm450_vm14, %v395_v29, 0.0  ;;  %v515_v6 = vsel %vm450_vm14, %v398_v46, 0.0  ;;  %vm258_vm11 = vcmp.eq.s32.totalorder %v964_v35, %v1146_v61 }
  0xfb   :  { %v579_v51 = vadd.f32 %v578_v38, %v501_v62  ;;  %v325_v38 = vsel %vm253_vm8, 0.9, %v1492_v26  ;;  %v511_v62 = vsel %vm450_vm14, %v394_v11, 0.0  ;;  %v399_v33 = vmul.f32 %v327_v55, %v952_v31 }
  0xfc   :  { %v329_v34 = vsel %vm257_vm15, 0.9, %v1492_v26  ;;  %vm259_vm12 = vcmp.eq.s32.totalorder %v967_v36, %v1146_v61  ;;  %v594_v21 = vsel %vm530_vm9, %v515_v6, 0.0  ;;  %v330_v35 = vsel %vm258_vm11, 0.9, %v1492_v26 }
  0xfd   :  { %v580_v23 = vadd.f32 %v579_v51, %v502_v2  ;;  %v397_v51 = vmul.f32 %v325_v38, %v88_v37  ;;  %v513_v2 = vsel %vm450_vm14, %v396_v15, 0.0  ;;  %vm260_vm2 = vcmp.eq.s32.totalorder %v970_v39, %v1146_v61 }
  0xfe   :  { %vm262_vm3 = vcmp.eq.s32.totalorder %v973_v40, %v1146_v61  ;;  %v331_v36 = vsel %vm259_vm12, 0.9, %v1492_v26  ;;  %vm261_vm4 = vcmp.eq.s32.totalorder %v984_v47, %v1146_v61  ;;  %v332_v39 = vsel %vm260_vm2, 0.9, %v1492_v26 }
  0xff   :  { %v581_v24 = vadd.f32 %v580_v23, %v503_v60  ;;  %v514_v50 = vsel %vm450_vm14, %v397_v51, 0.0  ;;  %v92_v60 = vld [vmem:[#allocation2 + $0x210] sm:$0xff]  ;;  %v404_v47 = vmul.f32 %v332_v39, %v95_v0 }
 0x100   :  { %v401_v31 = vmul.f32 %v329_v34, %v92_v60 }
 0x101   :  { %v582_v48 = vadd.f32 %v581_v24, %v504_v57  ;;  %v400_v24 = vmul.f32 %v328_v32, %v91_v3  ;;  %v1495_v57 = vld [vmem:[#allocation8_spill] sm:$0xff] }
 0x102   :  { %vm451_vm1 = vcmp.eq.s32.totalorder %v1495_v57, 1 }
 0x103   :  { %v583_v59 = vadd.f32 %v582_v48, %v505_v22  ;;  %v93_v48 = vld [vmem:[#allocation2 + $0x218] sm:$0xff]  ;;  %v516_v49 = vsel %vm451_vm1, %v399_v33, 0.0  ;;  %v94_v22 = vld [vmem:[#allocation2 + $0x220] sm:$0xff]  ;;  %v517_v9 = vsel %vm451_vm1, %v400_v24, 0.0  ;;  %v518_v40 = vsel %vm451_vm1, %v401_v31, 0.0 }
 0x104   :  { %v403_v17 = vmul.f32 %v331_v36, %v94_v22  ;;  %v521_v53 = vsel %vm451_vm1, %v404_v47, 0.0 }
 0x105   :  { %v584_v52 = vadd.f32 %v583_v59, %v506_v4  ;;  %v402_v59 = vmul.f32 %v330_v35, %v93_v48 }
 0x106   :  { %v520_v30 = vsel %vm451_vm1, %v403_v17, 0.0 }
 0x107   :  { %v586_v12 = vadd.f32 %v585_v28, %v584_v52  ;;  %v334_v52 = vsel %vm262_vm3, 0.9, %v1492_v26  ;;  %v333_v28 = vsel %vm261_vm4, 0.9, %v1492_v26  ;;  %v519_v61 = vsel %vm451_vm1, %v402_v59, 0.0 }
 0x108   :  { %v405_v44 = vmul.f32 %v333_v28, %v96_v5 }
 0x109   :  { %v587_v42 = vadd.f32 %v586_v12, %v508_v7  ;;  %v406_v12 = vmul.f32 %v334_v52, %v97_v45 }
 0x10a   :  { %v522_v26 = vsel %vm451_vm1, %v405_v44, 0.0 }
 0x10b   :  { %v588_v56 = vadd.f32 %v587_v42, %v509_v13  ;;  %v523_v25 = vsel %vm451_vm1, %v406_v12, 0.0 }
 0x10c   :  { %v603_v13 = vsel %vm530_vm9, %v523_v25, 0.0 }
 0x10d   :  { %v589_v16 = vadd.f32 %v588_v56, %v510_v18 }
 0x10f   :  { %v590_v41 = vadd.f32 %v589_v16, %v511_v62 }
 0x111   :  { %v591_v1 = vadd.f32 %v590_v41, %v512_v54 }
 0x113   :  { %v592_v23 = vadd.f32 %v591_v1, %v513_v2 }
 0x115   :  { %v593_v14 = vadd.f32 %v592_v23, %v514_v50 }
 0x117   :  { %v595_v8 = vadd.f32 %v594_v21, %v593_v14 }
 0x119   :  { %v596_v58 = vadd.f32 %v595_v8, %v516_v49 }
 0x11b   :  { %v597_v4 = vadd.f32 %v596_v58, %v517_v9 }
 0x11d   :  { %v598_v10 = vadd.f32 %v597_v4, %v518_v40 }
 0x11f   :  { %v599_v43 = vadd.f32 %v598_v10, %v519_v61 }
 0x121   :  { %v600_v7 = vadd.f32 %v599_v43, %v520_v30 }
 0x123   :  { %v601_v42 = vadd.f32 %v600_v7, %v521_v53 }
 0x125   :  { %v602_v11 = vadd.f32 %v601_v42, %v522_v26 }
 0x127   :  { %v604_v63 = vadd.f32 %v603_v13, %v602_v11 }
 0x129   :  { %605 = vadd.xlane.f32.xlu1 %v604_v63 }
 0x17c   :  { %v678_v27 = vpop.xlane.xlu0 %677 }
 0x17d   :  { %v679_v19 = vrot.slane %v678_v27, 4 }
 0x17f   :  { %v680_v18 = vadd.f32 %v679_v19, %v678_v27 }
 0x180   :  { %v715_v56 = vpop.xlane.xlu0 %714 }
 0x181   :  { %v716_v29 = vrot.slane %v715_v56, 4  ;;  %v681_v37 = vrot.slane %v680_v18, 2 }
 0x183   :  { %v717_v20 = vadd.f32 %v716_v29, %v715_v56  ;;  %v682_v41 = vadd.f32 %v681_v37, %v680_v18 }
 0x185   :  { %v718_v16 = vrot.slane %v717_v20, 2  ;;  %v683_v55 = vrot.slane %v682_v41, 1 }
 0x187   :  { %v719_v46 = vadd.f32 %v718_v16, %v717_v20  ;;  %v684_v32 = vadd.f32 %v683_v55, %v682_v41 }
 0x189   :  { %v720_v2 = vrot.slane %v719_v46, 1 }
 0x18b   :  { %v721_v6 = vadd.f32 %v720_v2, %v719_v46 }
 0x1b6   :  { %v606_v38 = vpop.xlane.xlu1 %605 }
 0x1b7   :  { %v607_v15 = vrot.slane %v606_v38, 4 }
 0x1b9   :  { %v608_v62 = vadd.f32 %v607_v15, %v606_v38 }
 0x1bb   :  { %v609_v51 = vrot.slane %v608_v62, 2 }
 0x1bd   :  { %v610_v54 = vadd.f32 %v609_v51, %v608_v62 }
 0x1bf   :  { %v611_v1 = vrot.slane %v610_v54, 1 }
 0x1c1   :  { %v612_v3 = vadd.f32 %v611_v1, %v610_v54 }
 0x1c3   :  { %751 = vpush %v612_v3 }
 0x1c4   :  { %753 = vpush %v684_v32 }
 0x1c5   :  { %755 = vpush %v721_v6 }
 0x1f4   :  { %s752_s12 = spop %751 }
 0x1f5   :  { %s754_s13 = spop %753 }
 0x1f6   :  { %s686_s14 = smul.f32 0.0001002004, %s754_s13  ;;  %s756_s15 = spop %755 }
 0x1f7   :  { %s723_s19 = smul.f32 -1.0156583, %s756_s15 }
 0x1f8   :  { %s687_s18 = ssub.f32 %s752_s12, %s686_s14 }
 0x1fa   :  { %s724_s20 = ssub.f32 %s723_s19, %s687_s18 }
 0x1fc   :  { %v725_v23 = vstv %s724_s20 }
 0x1fd   :  { %726 = vst [vmem:[#allocation5] sm:$0xff] %v725_v23 }
 0x1fe   :  { %800 = shalt.err (!%p797_p12)
}
 0x1ff   :  { %s801_s24 = scalar_lea.hbm %s1483_s2, 128 }
 0x200   :  { %p802_p13 = scmp.ne.s32.totalorder %s1483_s2, %s801_s24  ;;  %p805_p0 = scmp.lt.u32.totalorder %s801_s24, %s1483_s2 }
 0x202   :  { %p807_p1 = pnand %p805_p0, %p802_p13 }
 0x204   :  { %810 = shalt.err (!%p807_p1)
}
 0x205   :  { %736 = dma.vmem_to_hbm [thread:$0]  %s734_s17, 128, %s1483_s2, [#allocation4]  }
 0x206   :  { %813 = dma.done.wait [#allocation4], 128  }
 0x207   :  { %814 = vsyncadd [#allocation4], 4294967168 }
 0x208   :  { %740 = vsyncpa [#allocation3], 1 }
 0x209   :  { %741 = vsyncpa [#allocation4], 1 }

</bundles_post_ra>
